<compile_context>
chip_gen: v6e
topology: v6e:2x2x1
jax: 0.10.0
libtpu: 0.0.40
codegen_flags: <defaults>
</compile_context>

<pallas_src>
import jax
import jax.numpy as jnp
from jax import lax
from jax.experimental import pallas as pl
from jax.experimental.pallas import tpu as pltpu


# ----------------------------------------------------------------------------
# Kernels
# ----------------------------------------------------------------------------
def _small_linear_kernel(x_ref, w_ref, b_ref, o_ref):
    """Whole problem in one VMEM block: y = x @ W.T + b."""
    acc = lax.dot_general(
        x_ref[...], w_ref[...],
        dimension_numbers=(((1,), (1,)), ((), ())),   # contract D of both
        preferred_element_type=jnp.float32,
    )
    o_ref[...] = (acc + b_ref[...]).astype(o_ref.dtype)


def _tiled_linear_kernel(x_ref, w_ref, b_ref, o_ref, acc_ref):
    """One (tm, tn) output tile; reduction over the innermost K grid axis.

    x_ref: (tm, tk)   activations
    w_ref: (tn, tk)   weight in PyTorch (out, in) layout — no transpose copy
    b_ref: (1,  tn)   bias (f32)
    o_ref: (tm, tn)   output tile
    acc_ref: VMEM f32 accumulator, persistent across the K axis.
    """
    k = pl.program_id(2)

    @pl.when(k == 0)
    def _():
        acc_ref[...] = jnp.zeros_like(acc_ref)

    acc_ref[...] += lax.dot_general(
        x_ref[...], w_ref[...],
        dimension_numbers=(((1,), (1,)), ((), ())),
        preferred_element_type=jnp.float32,
    )

    @pl.when(k == pl.num_programs(2) - 1)
    def _():
        o_ref[...] = (acc_ref[...] + b_ref[...]).astype(o_ref.dtype)


# ----------------------------------------------------------------------------
# Tiling / budget helpers
# ----------------------------------------------------------------------------
def _round_up(v, m):
    return ((v + m - 1) // m) * m


def _pick_tile(dim, align, cap):
    """Pick (tile, padded_extent): tile is a multiple of `align`, <= cap.

    Prefers a tile that exactly divides the minimally-aligned extent (zero
    extra padding, no jnp.pad copy); only pads up to the max tile when the
    best divisor would be degenerately small.
    """
    p = _round_up(dim, align)
    t_max = (cap // align) * align
    if p <= t_max:
        return p, p
    t_div = align
    t = t_max
    while t >= align:
        if p % t == 0:
            t_div = t
            break
        t -= align
    if 4 * t_div >= t_max:           # reasonably large divisor -> no padding
        return t_div, p
    return t_max, _round_up(p, t_max)  # otherwise pad up to big tiles


def _hw_budget():
    """Generation-aware tile caps + scoped-VMEM limit."""
    vmem_cap = None
    try:
        vmem_cap = int(pltpu.get_tpu_info().vmem_capacity_bytes)
    except Exception:
        vmem_cap = None
    if vmem_cap is not None and vmem_cap > 96 * 1024 * 1024:
        # v5e / v6e: 128 MiB physical VMEM per TensorCore.
        return dict(tm_cap=512, tn_cap=512, tk_cap=1024,
                    vmem_limit=64 * 1024 * 1024)
    # v7x (64 MiB per TC) or unknown generation: stay conservative.
    return dict(tm_cap=512, tn_cap=512, tk_cap=1024,
                vmem_limit=48 * 1024 * 1024)


def _streamed_spec(block_shape, index_map, buffers):
    if buffers is not None and buffers > 2:
        return pl.BlockSpec(block_shape, index_map,
                            pipeline_mode=pl.Buffered(buffers))
    return pl.BlockSpec(block_shape, index_map)


_SMALL_BYTES = 2 * 1024 * 1024   # dispatch threshold for the single-block path


# ----------------------------------------------------------------------------
# Wrapper: y = x @ weight.T + bias   (torch.nn.Linear semantics)
# ----------------------------------------------------------------------------
def linear_forward(x, weight, bias, *, use_bf16_inputs=False, input_buffers=2):
    """x: (B, D) f32; weight: (C, D) f32 (PyTorch layout); bias: (C,) f32."""
    B, D = x.shape
    C, D2 = weight.shape
    assert D == D2, "weight inner dim must match x inner dim"
    out_dtype = x.dtype

    # --- Small-shape path: whole problem as one VMEM block, no grid, no pad.
    if 4 * (B * D + C * D + B * C + C) <= _SMALL_BYTES:
        return pl.pallas_call(
            _small_linear_kernel,
            out_shape=jax.ShapeDtypeStruct((B, C), out_dtype),
        )(x, weight, bias.reshape(1, C))

    # --- Tiled path.
    budget = _hw_budget()
    tm, Bp = _pick_tile(B, 8, budget["tm_cap"])
    tn, Cp = _pick_tile(C, 128, budget["tn_cap"])
    tk, Dp = _pick_tile(D, 128, budget["tk_cap"])

    # Pad only when the chosen tiles don't divide the true extents.
    xp = x if (Bp == B and Dp == D) else jnp.pad(x, ((0, Bp - B), (0, Dp - D)))
    wp = weight if (Cp == C and Dp == D) else jnp.pad(
        weight, ((0, Cp - C), (0, Dp - D)))
    bp = (bias if Cp == C else jnp.pad(bias, (0, Cp - C))).reshape(1, Cp)

    if use_bf16_inputs:
        # bf16 operands for the MXU; accumulation + bias epilogue stay f32.
        xp = xp.astype(jnp.bfloat16)
        wp = wp.astype(jnp.bfloat16)

    grid = (Bp // tm, Cp // tn, Dp // tk)
    itemsize = jnp.dtype(xp.dtype).itemsize

    cost = pl.CostEstimate(
        flops=2 * Bp * Dp * Cp,
        transcendentals=0,
        bytes_accessed=itemsize * (Bp * Dp + Cp * Dp) + 4 * (Cp + Bp * Cp),
    )

    yp = pl.pallas_call(
        _tiled_linear_kernel,
        out_shape=jax.ShapeDtypeStruct((Bp, Cp), out_dtype),
        grid_spec=pltpu.PrefetchScalarGridSpec(
            num_scalar_prefetch=0,
            grid=grid,
            in_specs=[
                _streamed_spec((tm, tk), lambda i, j, k: (i, k), input_buffers),  # x
                _streamed_spec((tn, tk), lambda i, j, k: (j, k), input_buffers),  # W (C, D)
                pl.BlockSpec((1, tn), lambda i, j, k: (0, j)),                    # bias
            ],
            out_specs=pl.BlockSpec((tm, tn), lambda i, j, k: (i, j)),
            scratch_shapes=[pltpu.VMEM((tm, tn), jnp.float32)],
        ),
        compiler_params=pltpu.CompilerParams(
            # M/N parallel (megacore / 2-TC sharding), K innermost reduction.
            dimension_semantics=("parallel", "parallel", "arbitrary"),
            vmem_limit_bytes=budget["vmem_limit"],
        ),
        cost_estimate=cost,
    )(xp, wp, bp)

    if Bp == B and Cp == C:
        return yp
    return yp[:B, :C]


# ----------------------------------------------------------------------------
# Self-test
# ----------------------------------------------------------------------------
if __name__ == "__main__":
    key = jax.random.PRNGKey(0)

    # Shapes implied by the module: batch=8, input_dim=32, num_classes=16.
    batch, input_dim, num_classes = 8, 32, 16
    kx, kw, kb = jax.random.split(key, 3)
    bound = 1.0 / (input_dim ** 0.5)
    x = jax.random.normal(kx, (batch, input_dim), dtype=jnp.float32)
    weight = jax.random.uniform(kw, (num_classes, input_dim),
                                minval=-bound, maxval=bound, dtype=jnp.float32)
    bias = jax.random.uniform(kb, (num_classes,),
                              minval=-bound, maxval=bound, dtype=jnp.float32)

    y = linear_forward(x, weight, bias)
    jax.block_until_ready(y)
    y_ref = x @ weight.T + bias
    assert y.shape == (batch, num_classes)
    assert jnp.allclose(y, y_ref, atol=1e-5, rtol=1e-5)

    # Larger shapes exercising the tiled path: grid (2, 2, 2), zero padding.
    B2, D2, C2 = 768, 1536, 768
    k2x, k2w, k2b = jax.random.split(jax.random.PRNGKey(1), 3)
    bound2 = 1.0 / (D2 ** 0.5)
    x2 = jax.random.normal(k2x, (B2, D2), dtype=jnp.float32)
    w2 = jax.random.uniform(k2w, (C2, D2), minval=-bound2, maxval=bound2,
                            dtype=jnp.float32)
    b2 = jax.random.uniform(k2b, (C2,), minval=-bound2, maxval=bound2,
                            dtype=jnp.float32)

    y2 = linear_forward(x2, w2, b2)
    jax.block_until_ready(y2)
    y2_ref = lax.dot_general(
        x2, w2, dimension_numbers=(((1,), (1,)), ((), ())),
        precision=lax.Precision.HIGHEST) + b2
    assert y2.shape == (B2, C2)
    assert jnp.allclose(y2, y2_ref, atol=1e-3, rtol=1e-3)

    # Optional bf16-operand MXU path (f32 accumulation): looser tolerance.
    y2_bf16 = linear_forward(x2, w2, b2, use_bf16_inputs=True)
    jax.block_until_ready(y2_bf16)
    assert jnp.allclose(y2_bf16, y2_ref, atol=5e-2, rtol=5e-2)

    print("KERNEL_OK")
</pallas_src>

<mosaic_0001>
module attributes {stable_mosaic.version = 11 : i64} {
  func.func @_small_linear_kernel(%arg0: memref<8x32xf32, #tpu.memory_space<vmem>>, %arg1: memref<16x32xf32, #tpu.memory_space<vmem>>, %arg2: memref<1x16xf32, #tpu.memory_space<vmem>>, %arg3: memref<8x16xf32, #tpu.memory_space<vmem>>) attributes {dimension_semantics = [], scalar_prefetch = 0 : i64, scratch_operands = 0 : i64, tpu.core_type = #tpu.core_type<tc>} {
    %c0 = arith.constant 0 : index
    %c0_0 = arith.constant 0 : index
    %0 = vector.load %arg0[%c0, %c0_0] : memref<8x32xf32, #tpu.memory_space<vmem>>, vector<8x32xf32>
    %c0_1 = arith.constant 0 : index
    %c0_2 = arith.constant 0 : index
    %1 = vector.load %arg1[%c0_1, %c0_2] : memref<16x32xf32, #tpu.memory_space<vmem>>, vector<16x32xf32>
    %cst = arith.constant dense<0.000000e+00> : vector<8x16xf32>
    %2 = tpu.matmul %0, %1, %cst {dimension_numbers = #tpu.dot_dimension_numbers<[1], [1], [0], [0], [0, 0, 1, 0], [], []>} : vector<8x32xf32>, vector<16x32xf32>, vector<8x16xf32> -> vector<8x16xf32>
    %c0_3 = arith.constant 0 : index
    %c0_4 = arith.constant 0 : index
    %3 = vector.load %arg2[%c0_3, %c0_4] : memref<1x16xf32, #tpu.memory_space<vmem>>, vector<1x16xf32>
    %4 = vector.broadcast %3 : vector<1x16xf32> to vector<8x16xf32>
    %5 = arith.addf %2, %4 : vector<8x16xf32>
    %c0_5 = arith.constant 0 : index
    %c0_6 = arith.constant 0 : index
    %6 = vector.load %arg3[%c0_5, %c0_6] : memref<8x16xf32, #tpu.memory_space<vmem>>, vector<8x16xf32>
    tpu.vector_store %arg3[%c0_5, %c0_6], %5 {strides = array<i32>} : memref<8x16xf32, #tpu.memory_space<vmem>>, vector<8x16xf32>,
    return
  }
}

</mosaic_0001>

<bundles_post_ra>
// kernel: tpu_custom_call.1
= control target key start
LH: loop header
LB: loop body
LE: loop exit
PB: predicated region body
PF: predicated region fallthrough
CT: control target
= control target key end

     0   :  { %8 = vsyncpa [#allocation3], 0  ;;  %s275_s0 = inlined_call_operand.hbm [shape: f32[8,32], index: 0, kind: input, shape index: {}]   ;;  %s276_s1 = inlined_call_operand.hbm [shape: f32[16,32], index: 1, kind: input, shape index: {}]   ;;  %s277_s2 = inlined_call_operand.vmem [shape: f32[1,16], index: 2, kind: input, shape index: {}]   ;;  %s278_s3 = inlined_call_operand.hbm [shape: f32[8,16], index: 3, kind: output, shape index: {}]  }
   0x1   :  { %9 = vsyncpa [#allocation6], 0 }
   0x2   :  { %10 = vsyncpa [#allocation4], 0  ;;  %s236_s12 = smov [#allocation2]   ;;  %s237_s14 = smov [#allocation5]  }
   0x3   :  { %s17_s13 = sshll.u32 %s236_s12, 4  ;;  %s26_s15 = sshll.u32 %s237_s14, 4  ;;  %s18_s13 = int_to_ptr.vmem [resolvable:$true] %s17_s13  ;;  %s27_s15 = int_to_ptr.vmem [resolvable:$true] %s26_s15 }
   0x4   :  { %s178_s16 = scalar_lea.vmem %s18_s13, 128  ;;  %p183_p1 = scmp.lt.s32.totalorder %s18_s13, %s18_s13 }
   0x5   :  { %p179_p0 = scmp.ne.s32.totalorder %s18_s13, %s178_s16  ;;  %p184_p2 = scmp.lt.s32.totalorder %s178_s16, %s178_s16 }
   0x7   :  { %p185_p3 = por %p184_p2, %p183_p1 }
   0x9   :  { %p186_p4 = pnand %p185_p3, %p179_p0 }
   0xb   :  { %189 = shalt.err (!%p186_p4)
}
   0xc   :  { %20 = dma.hbm_to_vmem [thread:$0]  %s275_s0, 128, %s18_s13, [#allocation3]  }
   0xd   :  { %s198_s19 = scalar_lea.vmem %s27_s15, 256  ;;  %p203_p6 = scmp.lt.s32.totalorder %s27_s15, %s27_s15 }
   0xe   :  { %p199_p5 = scmp.ne.s32.totalorder %s27_s15, %s198_s19  ;;  %p204_p7 = scmp.lt.s32.totalorder %s198_s19, %s198_s19 }
  0x10   :  { %p205_p8 = por %p204_p7, %p203_p6 }
  0x12   :  { %p206_p9 = pnand %p205_p8, %p199_p5 }
  0x14   :  { %209 = shalt.err (!%p206_p9)
}
  0x15   :  { %s238_s20 = smov 128   ;;  %s239_s21 = smov 8  }
  0x16   :  { %32 = dma.hbm_to_vmem [thread:$0]  %s276_s1, 256, %s27_s15, [#allocation6], %s238_s20, %s238_s20, %s239_s21  }
  0x17   :  { %230 = dma.done.wait [#allocation3], 128  }
  0x18   :  { %231 = vsyncadd [#allocation3], 4294967168 }
  0x19   :  { %232 = dma.done.wait [#allocation6], 256  }
  0x1a   :  { %233 = vsyncadd [#allocation6], 4294967040  ;;  %v240_v0 = vmov 0.0   ;;  %vm241_vm0 = vmmov 0   ;;  %vm51_vm1 = vcmask 261120   ;;  %v43_v1 = vld [vmem:[#allocation5 + $0x8] sm:$0xff] }
  0x1b   :  { %156 = vmatprep.subr.mxu0 %v240_v0  ;;  %160 = vmatprep.mubr.msk.f32.mxu0 %vm241_vm0, %v240_v0  ;;  %v42_v2 = vld [vmem:[#allocation5] sm:$0xff]  ;;  %v41_v3 = vld [vmem:[#allocation2] sm:$0xff]  ;;  %s242_s1 = smov [#allocation7]   ;;  %vm131_vm2 = vcmask 130048  }
  0x1c   :  { %157 = vmatpush3.xpose.msk.msra.mxu0 %vm51_vm1, %v43_v1  ;;  %v149_v4 = vld [vmem:[%s277_s2] ss:$0 sm:$0xff]  ;;  %s139_s25 = sshll.u32 %s242_s1, 4  ;;  %s140_s25 = int_to_ptr.vmem [resolvable:$true] %s139_s25 }
  0x1d   :  { %158 = vmatprep.subr.mxu0 %v240_v0  ;;  %s210_s26 = scalar_lea.vmem %s140_s25, 128  ;;  %p215_p11 = scmp.lt.s32.totalorder %s140_s25, %s140_s25 }
  0x1e   :  { %p211_p10 = scmp.ne.s32.totalorder %s140_s25, %s210_s26  ;;  %p216_p12 = scmp.lt.s32.totalorder %s210_s26, %s210_s26 }
  0x20   :  { %159 = vmatpush3.xpose.msk.msra.mxu0 %vm51_vm1, %v42_v2  ;;  %p217_p13 = por %p216_p12, %p215_p11 }
  0x22   :  { %p218_p0 = pnand %p217_p13, %p211_p10 }
  0x23   :  { %161 = vmatmul.mubr.msk.f32.vlgmr.msra.gmra.mxu0 %vm51_vm1, %v41_v3 }
  0xe3   :  { %v127_v5 = vpop.f32.mrf.mxu0 }
  0xe4   :  { %v128_v6 = vadd.f32 %v149_v4, %v127_v5 }
  0xe5   :  { %v162_v7 = vpop.f32.mrf.mxu0 }
  0xe6   :  { %132 = vst.msk [vmem:[#allocation7] sm:$0xff] %vm131_vm2, %v128_v6 }
  0xe7   :  { %221 = shalt.err (!%p218_p0)
}
  0xe8   :  { %142 = dma.vmem_to_hbm [thread:$0]  %s140_s25, 128, %s278_s3, [#allocation4]  }
  0xe9   :  { %234 = dma.done.wait [#allocation4], 128  }
  0xea   :  { %235 = vsyncadd [#allocation4], 4294967168 }
  0xeb   :  { %146 = vsyncpa [#allocation3], 1 }
  0xec   :  { %147 = vsyncpa [#allocation6], 1 }
  0xed   :  { %148 = vsyncpa [#allocation4], 1 }

</bundles_post_ra>
